<compile_context>
chip_gen: v6e
topology: v6e:2x2x1
jax: 0.10.0
libtpu: 0.0.40
codegen_flags: <defaults>
</compile_context>

<pallas_src>
import jax
import jax.numpy as jnp
from jax.experimental import pallas as pl
from jax.experimental.pallas import tpu as pltpu

# ----------------------------- model dims ----------------------------------
MAX_SEQ_LEN = 8          # args.max_seq_len
NUM_COLS = 2             # len(args.num_cols)
CATE_COLS = 2            # len(args.cate_cols)
COL_LEN = NUM_COLS + CATE_COLS
D_IN = MAX_SEQ_LEN * COL_LEN              # 32
H1, H2, H3, D_OUT = 1024, 128, 64, 18
H3_PAD = 128                               # lane-dense layer-3 width (64 -> 128, zeros)
D_OUT_PAD = 32                             # output width 18 -> 32 (full-last-dim block)

# Concatenated-bias layout; every segment starts on a 128-lane boundary.
B1_OFF = 0
B2_OFF = H1                                # 1024
B3_OFF = H1 + H2                           # 1152
B4_OFF = H1 + H2 + H3_PAD                  # 1280
B_TOTAL = B4_OFF + 128                     # 1408 (b4 segment kept 128-wide for alignment)

TM_MAX = 1024            # batch tile upper bound (multiple of 8)
BATCH = 2


def _round_up(n, m):
    return (n + m - 1) // m * m


def _pick_tm(b):
    """Largest multiple-of-8 batch tile <= TM_MAX with last-tile waste <= ~10%."""
    b8 = _round_up(b, 8)
    tm = min(TM_MAX, b8)
    while tm > 8 and _round_up(b8, tm) > 1.1 * b8:
        tm = max(8, tm // 2)
    return tm


# ------------------------------ kernel --------------------------------------
def _mlp_kernel(x_ref, w1_ref, w2_ref, w3_ref, w4_ref, b_ref, o_ref):
    # f32 -> bf16 cast done in-kernel (free on the VPU; no wrapper HBM pass).
    x = x_ref[...].astype(jnp.bfloat16)
    h = jnp.dot(x, w1_ref[...], preferred_element_type=jnp.float32)
    h = jnp.maximum(h + b_ref[:, B1_OFF:B1_OFF + H1], 0.0)

    h = jnp.dot(h.astype(jnp.bfloat16), w2_ref[...],
                preferred_element_type=jnp.float32)
    h = jnp.maximum(h + b_ref[:, B2_OFF:B2_OFF + H2], 0.0)

    h = jnp.dot(h.astype(jnp.bfloat16), w3_ref[...],
                preferred_element_type=jnp.float32)
    h = jnp.maximum(h + b_ref[:, B3_OFF:B3_OFF + H3_PAD], 0.0)

    logits = jnp.dot(h.astype(jnp.bfloat16), w4_ref[...],
                     preferred_element_type=jnp.float32)
    logits = logits + b_ref[:, B4_OFF:B4_OFF + D_OUT_PAD]
    o_ref[...] = jax.nn.sigmoid(logits)        # (TM, 32) f32, full-last-dim store


# ------------------------------ wrapper --------------------------------------
@jax.jit
def dnn_forward(x_flat, params):
    """x_flat: (batch, D_IN) f32; params: bf16 (in,out) weights + concat f32 bias."""
    b = x_flat.shape[0]
    tm = _pick_tm(b)
    num_tiles = pl.cdiv(b, tm)
    rows = num_tiles * tm

    flops = 2 * rows * (D_IN * H1 + H1 * H2 + H2 * H3_PAD + H3_PAD * D_OUT_PAD)
    bytes_accessed = (
        rows * D_IN * 4                                            # x (f32)
        + sum(int(params[k].size) * 2 for k in ("w1", "w2", "w3", "w4"))
        + int(params["bias"].size) * 4
        + rows * D_OUT_PAD * 4)                                    # out (f32)

    # Megacore split only pays off with enough tiles per core; otherwise it
    # just duplicates the resident-weight DMA on v7x.
    semantics = ("parallel",) if num_tiles >= 8 else ("arbitrary",)

    out = pl.pallas_call(
        _mlp_kernel,
        out_shape=jax.ShapeDtypeStruct((b, D_OUT_PAD), jnp.float32),
        grid=(num_tiles,),
        in_specs=[
            pl.BlockSpec((tm, D_IN), lambda i: (i, 0)),       # batch tile streams
            pl.BlockSpec((D_IN, H1), lambda i: (0, 0)),       # weights: resident,
            pl.BlockSpec((H1, H2), lambda i: (0, 0)),         #   DMA'd once
            pl.BlockSpec((H2, H3_PAD), lambda i: (0, 0)),
            pl.BlockSpec((H3_PAD, D_OUT_PAD), lambda i: (0, 0)),
            pl.BlockSpec((1, B_TOTAL), lambda i: (0, 0)),     # concatenated biases
        ],
        out_specs=pl.BlockSpec((tm, D_OUT_PAD), lambda i: (i, 0)),
        compiler_params=pltpu.CompilerParams(
            dimension_semantics=semantics),
        cost_estimate=pl.CostEstimate(
            flops=flops,
            transcendentals=rows * D_OUT_PAD,
            bytes_accessed=bytes_accessed),
    )(x_flat, params["w1"], params["w2"], params["w3"], params["w4"],
      params["bias"])

    # Rows already match b (partial last block handled by Pallas); only the
    # tiny 18-of-32 column slice remains.
    return out[:, :D_OUT]


# --------------------------- parameter init ----------------------------------
def init_params(key):
    """nn.Linear-style init (uniform +/- 1/sqrt(fan_in)).  Weights stored as
    (in, out) bf16; layer 3 padded 64->128 cols, layer 4 padded to (128, 32)
    with zero rows/cols; the four biases are concatenated into one (1, 1408)
    f32 row with 128-aligned segments."""
    dims = [(D_IN, H1), (H1, H2), (H2, H3), (H3, D_OUT)]
    ws, bs = [], []
    for fan_in, fan_out in dims:
        key, kw, kb = jax.random.split(key, 3)
        bound = 1.0 / jnp.sqrt(float(fan_in))
        ws.append(jax.random.uniform(kw, (fan_in, fan_out), jnp.float32,
                                     -bound, bound))
        bs.append(jax.random.uniform(kb, (fan_out,), jnp.float32, -bound, bound))

    w3_pad = jnp.zeros((H2, H3_PAD), jnp.float32).at[:, :H3].set(ws[2])
    w4_pad = jnp.zeros((H3_PAD, D_OUT_PAD), jnp.float32).at[:H3, :D_OUT].set(ws[3])

    bias = jnp.zeros((1, B_TOTAL), jnp.float32)
    bias = bias.at[0, B1_OFF:B1_OFF + H1].set(bs[0])
    bias = bias.at[0, B2_OFF:B2_OFF + H2].set(bs[1])
    bias = bias.at[0, B3_OFF:B3_OFF + H3].set(bs[2])
    bias = bias.at[0, B4_OFF:B4_OFF + D_OUT].set(bs[3])

    return {
        "w1": ws[0].astype(jnp.bfloat16),
        "w2": ws[1].astype(jnp.bfloat16),
        "w3": w3_pad.astype(jnp.bfloat16),
        "w4": w4_pad.astype(jnp.bfloat16),
        "bias": bias,
    }


# ------------------------------- glue ----------------------------------------
def preprocess(input_list):
    """Replicates: torch.stack(input[:-1]) -> (col_len, batch, seq); .view(batch, -1)."""
    stacked = jnp.stack(input_list[:-1], axis=0)          # (col_len, batch, seq)
    batch = stacked.shape[1]
    return stacked.reshape(batch, -1)                     # row-major == torch .view


def reference_forward(x_flat, params):
    """Pure-JAX reference mirroring the kernel's bf16-matmul / f32-accumulate math."""
    b = params["bias"][0]
    h = jnp.dot(x_flat.astype(jnp.bfloat16), params["w1"],
                preferred_element_type=jnp.float32)
    h = jnp.maximum(h + b[B1_OFF:B1_OFF + H1], 0.0)
    h = jnp.dot(h.astype(jnp.bfloat16), params["w2"],
                preferred_element_type=jnp.float32)
    h = jnp.maximum(h + b[B2_OFF:B2_OFF + H2], 0.0)
    h = jnp.dot(h.astype(jnp.bfloat16), params["w3"],
                preferred_element_type=jnp.float32)
    h = jnp.maximum(h + b[B3_OFF:B3_OFF + H3_PAD], 0.0)
    logits = jnp.dot(h.astype(jnp.bfloat16), params["w4"],
                     preferred_element_type=jnp.float32)
    logits = logits + b[B4_OFF:B4_OFF + D_OUT_PAD]
    return jax.nn.sigmoid(logits)[:, :D_OUT]


# ------------------------------- main -----------------------------------------
if __name__ == "__main__":
    key = jax.random.PRNGKey(0)
    key, pkey = jax.random.split(key)
    params = init_params(pkey)

    # The module's forward receives a list of (batch, seq_len) columns; the
    # last entry is the target and is dropped before stacking.
    cols = []
    for _ in range(COL_LEN + 1):
        key, ck = jax.random.split(key)
        cols.append(jax.random.normal(ck, (BATCH, MAX_SEQ_LEN), jnp.float32))

    x_flat = preprocess(cols)                              # (BATCH, D_IN)
    out = dnn_forward(x_flat, params)                      # (BATCH, 18)
    out = jax.block_until_ready(out)

    assert out.shape == (BATCH, D_OUT)
    assert bool(jnp.all(jnp.isfinite(out)))
    assert bool(jnp.all((out >= 0.0) & (out <= 1.0)))      # sigmoid range (non-strict)
    ref = reference_forward(x_flat, params)
    assert bool(jnp.allclose(out, ref, atol=1e-3, rtol=1e-3))
    print("KERNEL_OK")
</pallas_src>

<mosaic_0001>
module attributes {stable_mosaic.version = 11 : i64} {
  func.func @_mlp_kernel(%arg0: i32, %arg1: memref<8x32xf32, #tpu.memory_space<vmem>>, %arg2: memref<32x1024xbf16, #tpu.memory_space<vmem>>, %arg3: memref<1024x128xbf16, #tpu.memory_space<vmem>>, %arg4: memref<128x128xbf16, #tpu.memory_space<vmem>>, %arg5: memref<128x32xbf16, #tpu.memory_space<vmem>>, %arg6: memref<1x1408xf32, #tpu.memory_space<vmem>>, %arg7: memref<8x32xf32, #tpu.memory_space<vmem>>) attributes {dimension_semantics = [#tpu.dimension_semantics<arbitrary>], iteration_bounds = array<i64: 1>, scalar_prefetch = 0 : i64, scratch_operands = 0 : i64, tpu.core_type = #tpu.core_type<tc>, window_params = [{transform_indices = @transform_0, window_bounds = array<i64: 8, 32>}, {pipeline_mode = #tpu.pipeline_mode<synchronous>, transform_indices = @transform_1, window_bounds = array<i64: 32, 1024>}, {pipeline_mode = #tpu.pipeline_mode<synchronous>, transform_indices = @transform_2, window_bounds = array<i64: 1024, 128>}, {pipeline_mode = #tpu.pipeline_mode<synchronous>, transform_indices = @transform_3, window_bounds = array<i64: 128, 128>}, {pipeline_mode = #tpu.pipeline_mode<synchronous>, transform_indices = @transform_4, window_bounds = array<i64: 128, 32>}, {pipeline_mode = #tpu.pipeline_mode<synchronous>, transform_indices = @transform_5, window_bounds = array<i64: 1, 1408>}, {transform_indices = @transform_6, window_bounds = array<i64: 8, 32>}]} {
    %c0 = arith.constant 0 : index
    %c0_0 = arith.constant 0 : index
    %0 = vector.load %arg1[%c0, %c0_0] : memref<8x32xf32, #tpu.memory_space<vmem>>, vector<8x32xf32>
    %1 = arith.truncf %0 : vector<8x32xf32> to vector<8x32xbf16>
    %c0_1 = arith.constant 0 : index
    %c0_2 = arith.constant 0 : index
    %2 = vector.load %arg2[%c0_1, %c0_2] : memref<32x1024xbf16, #tpu.memory_space<vmem>>, vector<32x1024xbf16>
    %cst = arith.constant dense<0.000000e+00> : vector<8x1024xf32>
    %3 = tpu.matmul %1, %2, %cst {dimension_numbers = #tpu.dot_dimension_numbers<[1], [0], [0], [1], [0, 0, 1, 1], [], []>} : vector<8x32xbf16>, vector<32x1024xbf16>, vector<8x1024xf32> -> vector<8x1024xf32>
    %c0_3 = arith.constant 0 : index
    %c0_4 = arith.constant 0 : index
    %4 = vector.load %arg6[%c0_3, %c0_4] : memref<1x1408xf32, #tpu.memory_space<vmem>>, vector<1x1024xf32>
    %5 = vector.broadcast %4 : vector<1x1024xf32> to vector<8x1024xf32>
    %6 = arith.addf %3, %5 : vector<8x1024xf32>
    %cst_5 = arith.constant 0.000000e+00 : f32
    %7 = vector.broadcast %cst_5 : f32 to vector<8x1024xf32>
    %8 = arith.maximumf %6, %7 : vector<8x1024xf32>
    %9 = arith.truncf %8 : vector<8x1024xf32> to vector<8x1024xbf16>
    %c0_6 = arith.constant 0 : index
    %c0_7 = arith.constant 0 : index
    %10 = vector.load %arg3[%c0_6, %c0_7] : memref<1024x128xbf16, #tpu.memory_space<vmem>>, vector<1024x128xbf16>
    %cst_8 = arith.constant dense<0.000000e+00> : vector<8x128xf32>
    %11 = tpu.matmul %9, %10, %cst_8 {dimension_numbers = #tpu.dot_dimension_numbers<[1], [0], [0], [1], [0, 0, 1, 1], [], []>} : vector<8x1024xbf16>, vector<1024x128xbf16>, vector<8x128xf32> -> vector<8x128xf32>
    %c0_9 = arith.constant 0 : index
    %c1024 = arith.constant 1024 : index
    %12 = vector.load %arg6[%c0_9, %c1024] : memref<1x1408xf32, #tpu.memory_space<vmem>>, vector<1x128xf32>
    %13 = vector.broadcast %12 : vector<1x128xf32> to vector<8x128xf32>
    %14 = arith.addf %11, %13 : vector<8x128xf32>
    %cst_10 = arith.constant 0.000000e+00 : f32
    %15 = vector.broadcast %cst_10 : f32 to vector<8x128xf32>
    %16 = arith.maximumf %14, %15 : vector<8x128xf32>
    %17 = arith.truncf %16 : vector<8x128xf32> to vector<8x128xbf16>
    %c0_11 = arith.constant 0 : index
    %c0_12 = arith.constant 0 : index
    %18 = vector.load %arg4[%c0_11, %c0_12] : memref<128x128xbf16, #tpu.memory_space<vmem>>, vector<128x128xbf16>
    %cst_13 = arith.constant dense<0.000000e+00> : vector<8x128xf32>
    %19 = tpu.matmul %17, %18, %cst_13 {dimension_numbers = #tpu.dot_dimension_numbers<[1], [0], [0], [1], [0, 0, 1, 1], [], []>} : vector<8x128xbf16>, vector<128x128xbf16>, vector<8x128xf32> -> vector<8x128xf32>
    %c0_14 = arith.constant 0 : index
    %c1152 = arith.constant 1152 : index
    %20 = vector.load %arg6[%c0_14, %c1152] : memref<1x1408xf32, #tpu.memory_space<vmem>>, vector<1x128xf32>
    %21 = vector.broadcast %20 : vector<1x128xf32> to vector<8x128xf32>
    %22 = arith.addf %19, %21 : vector<8x128xf32>
    %cst_15 = arith.constant 0.000000e+00 : f32
    %23 = vector.broadcast %cst_15 : f32 to vector<8x128xf32>
    %24 = arith.maximumf %22, %23 : vector<8x128xf32>
    %25 = arith.truncf %24 : vector<8x128xf32> to vector<8x128xbf16>
    %c0_16 = arith.constant 0 : index
    %c0_17 = arith.constant 0 : index
    %26 = vector.load %arg5[%c0_16, %c0_17] : memref<128x32xbf16, #tpu.memory_space<vmem>>, vector<128x32xbf16>
    %cst_18 = arith.constant dense<0.000000e+00> : vector<8x32xf32>
    %27 = tpu.matmul %25, %26, %cst_18 {dimension_numbers = #tpu.dot_dimension_numbers<[1], [0], [0], [1], [0, 0, 1, 1], [], []>} : vector<8x128xbf16>, vector<128x32xbf16>, vector<8x32xf32> -> vector<8x32xf32>
    %c0_19 = arith.constant 0 : index
    %c1280 = arith.constant 1280 : index
    %28 = vector.load %arg6[%c0_19, %c1280] : memref<1x1408xf32, #tpu.memory_space<vmem>>, vector<1x32xf32>
    %29 = vector.broadcast %28 : vector<1x32xf32> to vector<8x32xf32>
    %30 = arith.addf %27, %29 : vector<8x32xf32>
    %31 = arith.negf %30 : vector<8x32xf32>
    %32 = math.exp %31 : vector<8x32xf32>
    %cst_20 = arith.constant 1.000000e+00 : f32
    %33 = vector.broadcast %cst_20 : f32 to vector<8x32xf32>
    %34 = arith.addf %33, %32 : vector<8x32xf32>
    %35 = arith.divf %33, %34 : vector<8x32xf32>
    %c0_21 = arith.constant 0 : index
    %c0_22 = arith.constant 0 : index
    %36 = vector.load %arg7[%c0_21, %c0_22] : memref<8x32xf32, #tpu.memory_space<vmem>>, vector<8x32xf32>
    tpu.vector_store %arg7[%c0_21, %c0_22], %35 {strides = array<i32>} : memref<8x32xf32, #tpu.memory_space<vmem>>, vector<8x32xf32>,
    return
  }
  func.func @transform_0(%arg0: i32) -> (i32, i32) {
    %c0_i32 = arith.constant 0 : i32
    %c0_i32_0 = arith.constant 0 : i32
    return %arg0, %c0_i32 : i32, i32
  }
  func.func @transform_1(%arg0: i32) -> (i32, i32) {
    %c0_i32 = arith.constant 0 : i32
    %c0_i32_0 = arith.constant 0 : i32
    %c0_i32_1 = arith.constant 0 : i32
    return %c0_i32, %c0_i32_0 : i32, i32
  }
  func.func @transform_2(%arg0: i32) -> (i32, i32) {
    %c0_i32 = arith.constant 0 : i32
    %c0_i32_0 = arith.constant 0 : i32
    %c0_i32_1 = arith.constant 0 : i32
    return %c0_i32, %c0_i32_0 : i32, i32
  }
  func.func @transform_3(%arg0: i32) -> (i32, i32) {
    %c0_i32 = arith.constant 0 : i32
    %c0_i32_0 = arith.constant 0 : i32
    %c0_i32_1 = arith.constant 0 : i32
    return %c0_i32, %c0_i32_0 : i32, i32
  }
  func.func @transform_4(%arg0: i32) -> (i32, i32) {
    %c0_i32 = arith.constant 0 : i32
    %c0_i32_0 = arith.constant 0 : i32
    %c0_i32_1 = arith.constant 0 : i32
    return %c0_i32, %c0_i32_0 : i32, i32
  }
  func.func @transform_5(%arg0: i32) -> (i32, i32) {
    %c0_i32 = arith.constant 0 : i32
    %c0_i32_0 = arith.constant 0 : i32
    %c0_i32_1 = arith.constant 0 : i32
    return %c0_i32, %c0_i32_0 : i32, i32
  }
  func.func @transform_6(%arg0: i32) -> (i32, i32) {
    %c0_i32 = arith.constant 0 : i32
    %c0_i32_0 = arith.constant 0 : i32
    return %arg0, %c0_i32 : i32, i32
  }
}

</mosaic_0001>

<bundles_post_ra>
// kernel: dnn_forward.1
= control target key start
LH: loop header
LB: loop body
LE: loop exit
PB: predicated region body
PF: predicated region fallthrough
CT: control target
= control target key end

     0   :  { %11 = vsyncpa [#allocation3], 0  ;;  %s1885_s0 = inlined_call_operand.vmem [shape: f32[2,32], index: 0, kind: input, shape index: {}]   ;;  %s1886_s1 = inlined_call_operand.hbm [shape: bf16[32,1024], index: 1, kind: input, shape index: {}]   ;;  %s1887_s2 = inlined_call_operand.hbm [shape: bf16[1024,128], index: 2, kind: input, shape index: {}]   ;;  %s1888_s3 = inlined_call_operand.vmem [shape: bf16[128,128], index: 3, kind: input, shape index: {}]   ;;  %s1889_s4 = inlined_call_operand.vmem [shape: bf16[128,32], index: 4, kind: input, shape index: {}]   ;;  %s1890_s5 = inlined_call_operand.vmem [shape: f32[1,1408], index: 5, kind: input, shape index: {}]   ;;  %s1891_s6 = inlined_call_operand.hbm [shape: f32[2,32], index: 6, kind: output, shape index: {}]  }
   0x1   :  { %12 = vsyncpa [#allocation6], 0 }
   0x2   :  { %13 = vsyncpa [#allocation4], 0  ;;  %s1718_s21 = smov [#allocation2]  }
   0x3   :  { %s21_s22 = sshll.u32 %s1718_s21, 4  ;;  %s22_s22 = int_to_ptr.vmem [resolvable:$true] %s21_s22 }
   0x4   :  { %s1660_s23 = scalar_lea.vmem %s22_s22, 2048  ;;  %p1665_p1 = scmp.lt.s32.totalorder %s22_s22, %s22_s22 }
   0x5   :  { %p1661_p0 = scmp.ne.s32.totalorder %s22_s22, %s1660_s23  ;;  %p1666_p2 = scmp.lt.s32.totalorder %s1660_s23, %s1660_s23 }
   0x7   :  { %p1667_p3 = por %p1666_p2, %p1665_p1 }
   0x9   :  { %p1668_p4 = pnand %p1667_p3, %p1661_p0 }
   0xb   :  { %1671 = shalt.err (!%p1668_p4)
}
   0xc   :  { %s1719_s24 = smov 512   ;;  %s1720_s25 = smov 32  }
   0xd   :  { %27 = dma.hbm_to_vmem [thread:$0]  %s1886_s1, 2048, %s22_s22, [#allocation3], %s1719_s24, %s1719_s24, %s1720_s25  }
   0xe   :  { %s1721_s28 = smov [#allocation5]  }
   0xf   :  { %s33_s29 = sshll.u32 %s1721_s28, 4  ;;  %s34_s29 = int_to_ptr.vmem [resolvable:$true] %s33_s29 }
  0x10   :  { %s1680_s30 = scalar_lea.vmem %s34_s29, 8192  ;;  %p1685_p6 = scmp.lt.s32.totalorder %s34_s29, %s34_s29 }
  0x11   :  { %p1681_p5 = scmp.ne.s32.totalorder %s34_s29, %s1680_s30  ;;  %p1686_p7 = scmp.lt.s32.totalorder %s1680_s30, %s1680_s30 }
  0x13   :  { %p1687_p8 = por %p1686_p7, %p1685_p6 }
  0x15   :  { %p1688_p9 = pnand %p1687_p8, %p1681_p5 }
  0x17   :  { %1691 = shalt.err (!%p1688_p9)
}
  0x18   :  { %s1722_s7 = smov 64   ;;  %s1723_s8 = smov 4  }
  0x19   :  { %39 = dma.hbm_to_vmem [thread:$0]  %s1887_s2, 8192, %s34_s29, [#allocation6], %s1722_s7, %s1722_s7, %s1723_s8  }
  0x1a   :  { %1712 = dma.done.wait [#allocation3], 2048  }
  0x1b   :  { %1713 = vsyncadd [#allocation3], 4294965248 }
  0x1c   :  { %1714 = dma.done.wait [#allocation6], 8192  }
  0x1d   :  { %1715 = vsyncadd [#allocation6], 4294959104  ;;  %v1724_v0 = vmov 0   ;;  %v63_v1 = vld [vmem:[#allocation2 + $0x40] sm:$0xff]  ;;  %v64_v3 = vld [vmem:[#allocation2 + $0x48] sm:$0xff]  ;;  %vm193_vm0 = vcmask 261120  }
  0x1e   :  { %229 = vmatprep.mubr.bf16.mxu0 %v1724_v0  ;;  %270 = vmatprep.mubr.bf16.mxu1 %v1724_v0  ;;  %v67_v2 = vld [vmem:[#allocation2 + $0x60] sm:$0xff]  ;;  %v68_v5 = vld [vmem:[#allocation2 + $0x68] sm:$0xff]  ;;  %v65_v15 = vld [vmem:[#allocation2 + $0x50] sm:$0xff]  ;;  %vm1726_vm1 = vmmov 0  }
  0x1f   :  { %v1316_v4 = vcombine.high %v63_v1, %v67_v2  ;;  %v1315_v6 = vcombine.low %v63_v1, %v67_v2  ;;  %v55_v7 = vld [vmem:[#allocation2] sm:$0xff]  ;;  %v1318_v9 = vcombine.high %v64_v3, %v68_v5  ;;  %v1317_v10 = vcombine.low %v64_v3, %v68_v5  ;;  %v56_v12 = vld [vmem:[#allocation2 + $0x8] sm:$0xff]  ;;  %v69_v16 = vld [vmem:[#allocation2 + $0x70] sm:$0xff] }
  0x20   :  { %v59_v8 = vld [vmem:[#allocation2 + $0x20] sm:$0xff]  ;;  %v60_v13 = vld [vmem:[#allocation2 + $0x28] sm:$0xff]  ;;  %v66_v17 = vld [vmem:[#allocation2 + $0x58] sm:$0xff]  ;;  %v1320_v22 = vcombine.high %v65_v15, %v69_v16  ;;  %v1319_v29 = vcombine.low %v65_v15, %v69_v16  ;;  %v73_v5 = vlaneseq }
  0x21   :  { %v1308_v11 = vcombine.high %v55_v7, %v59_v8  ;;  %209 = vmatprep.subr.bf16.mxu0 %v1316_v4  ;;  %v1310_v14 = vcombine.high %v56_v12, %v60_v13  ;;  %250 = vmatprep.subr.bf16.mxu1 %v1318_v9  ;;  %v1307_v18 = vcombine.low %v55_v7, %v59_v8  ;;  %v53_v19 = vld [vmem:[%s1885_s0] sm:$0xff]  ;;  %v70_v20 = vld [vmem:[#allocation2 + $0x78] sm:$0xff]  ;;  %v57_v23 = vld [vmem:[#allocation2 + $0x10] sm:$0xff] }
  0x22   :  { %210 = vmatpush1.bf16.msra.mxu0 %v1315_v6  ;;  %251 = vmatpush1.bf16.msra.mxu1 %v1317_v10  ;;  %v1309_v21 = vcombine.low %v56_v12, %v60_v13  ;;  %v61_v24 = vld [vmem:[#allocation2 + $0x30] sm:$0xff]  ;;  %v1322_v25 = vcombine.high %v66_v17, %v70_v20  ;;  %v58_v26 = vld [vmem:[#allocation2 + $0x18] sm:$0xff]  ;;  %v54_v27 = vpack.c.bf16 %v53_v19, %v53_v19  ;;  %v1576_v43 = vld [vmem:[#allocation5 + $0x68] sm:$0xff]   ;;  %v1778_v6 = vshrl.u32 %v73_v5, 7 }
  0x23   :  { %211 = vmatprep.subr.bf16.mxu0 %v1308_v11  ;;  %252 = vmatprep.subr.bf16.mxu1 %v1310_v14  ;;  %v62_v28 = vld [vmem:[#allocation2 + $0x38] sm:$0xff]  ;;  %v1321_v30 = vcombine.low %v66_v17, %v70_v20  ;;  %v1312_v31 = vcombine.high %v57_v23, %v61_v24  ;;  %v1311_v33 = vcombine.low %v57_v23, %v61_v24  ;;  %v1572_v39 = vld [vmem:[#allocation5 + $0x70] sm:$0xff]   ;;  %v1577_v44 = vld [vmem:[#allocation5 + $0xe8] sm:$0xff]  }
  0x24   :  { %v1314_v32 = vcombine.high %v58_v26, %v62_v28  ;;  %v1313_v34 = vcombine.low %v58_v26, %v62_v28  ;;  %v1568_v35 = vld [vmem:[#allocation5 + $0x78] sm:$0xff]   ;;  %v1573_v40 = vld [vmem:[#allocation5 + $0xf0] sm:$0xff]   ;;  %v1578_v45 = vld [vmem:[#allocation5 + $0x28] sm:$0xff]   ;;  %v75_v7 = vsub.s32 0, %v1778_v6  ;;  %v83_v9 = vsub.s32 2, %v1778_v6 }
  0x25   :  { %v1569_v36 = vld [vmem:[#allocation5 + $0xf8] sm:$0xff]   ;;  %v1574_v41 = vld [vmem:[#allocation5 + $0x30] sm:$0xff]   ;;  %v1579_v46 = vld [vmem:[#allocation5 + $0xa8] sm:$0xff]   ;;  %v79_v10 = vsub.s32 1, %v1778_v6  ;;  %v87_v11 = vsub.s32 3, %v1778_v6  ;;  %v95_v23 = vsub.s32 5, %v1778_v6 }
  0x26   :  { %212 = vmatpush1.bf16.msra.mxu0 %v1307_v18  ;;  %253 = vmatpush1.bf16.msra.mxu1 %v1309_v21  ;;  %v1570_v37 = vld [vmem:[#allocation5 + $0x38] sm:$0xff]   ;;  %v1575_v42 = vld [vmem:[#allocation5 + $0xb0] sm:$0xff]   ;;  %v1580_v47 = vld [vmem:[#allocation5 + $0x60] sm:$0xff]   ;;  %v103_v28 = vsub.s32 7, %v1778_v6 }
  0x27   :  { %291 = vmatprep.subr.bf16.mxu0 %v1320_v22  ;;  %332 = vmatprep.subr.bf16.mxu1 %v1322_v25  ;;  %v1571_v38 = vld [vmem:[#allocation5 + $0xb8] sm:$0xff]   ;;  %v1581_v48 = vld [vmem:[#allocation5 + $0xe0] sm:$0xff]   ;;  %v1588_v55 = vld [vmem:[#allocation5 + $0x50] sm:$0xff]  }
  0x28   :  { %v1582_v49 = vld [vmem:[#allocation5 + $0x20] sm:$0xff]   ;;  %v1584_v51 = vld [vmem:[#allocation5 + $0x58] sm:$0xff]   ;;  %v1589_v56 = vld [vmem:[#allocation5 + $0xd0] sm:$0xff]  }
  0x29   :  { %1323 = vmatmul.mubr.msk.bf16.vlgmr.msra.gmra.mxu0 %vm193_vm0, %v54_v27  ;;  %1324 = vmatmul.mubr.msk.bf16.vlgmr.msra.gmra.mxu1 %vm193_vm0, %v54_v27  ;;  %v1583_v50 = vld [vmem:[#allocation5 + $0xa0] sm:$0xff]   ;;  %v1585_v52 = vld [vmem:[#allocation5 + $0xd8] sm:$0xff]   ;;  %v1590_v57 = vld [vmem:[#allocation5 + $0x10] sm:$0xff]  }
  0x2a   :  { %292 = vmatpush1.bf16.msra.mxu0 %v1319_v29  ;;  %333 = vmatpush1.bf16.msra.mxu1 %v1321_v30  ;;  %v1586_v53 = vld [vmem:[#allocation5 + $0x18] sm:$0xff]   ;;  %v1591_v58 = vld [vmem:[#allocation5 + $0x90] sm:$0xff]   ;;  %v1592_v59 = vld [vmem:[#allocation5 + $0x48] sm:$0xff]  }
  0x2b   :  { %293 = vmatprep.subr.bf16.mxu0 %v1312_v31  ;;  %334 = vmatprep.subr.bf16.mxu1 %v1314_v32  ;;  %v1587_v54 = vld [vmem:[#allocation5 + $0x98] sm:$0xff]   ;;  %v1593_v60 = vld [vmem:[#allocation5 + $0xc8] sm:$0xff]   ;;  %v1596_v63 = vld [vmem:[#allocation5 + $0x40] sm:$0xff]  }
  0x2c   :  { %311 = vmatprep.mubr.bf16.mxu0 %v1724_v0  ;;  %352 = vmatprep.mubr.bf16.mxu1 %v1724_v0  ;;  %v1594_v61 = vld [vmem:[#allocation5 + $0x8] sm:$0xff]   ;;  %v1597_v0 = vld [vmem:[#allocation5 + $0xc0] sm:$0xff]   ;;  %v1600_v3 = vld [vmem:[#allocation5 + $0x178] sm:$0xff]  }
  0x2d   :  { %v1595_v62 = vld [vmem:[#allocation5 + $0x88] sm:$0xff]   ;;  %v1598_v1 = vld [vmem:[#allocation5] sm:$0xff]   ;;  %v1601_v4 = vld [vmem:[#allocation5 + $0x1f8] sm:$0xff]  }
  0x2e   :  { %294 = vmatpush1.bf16.msra.mxu0 %v1311_v33  ;;  %335 = vmatpush1.bf16.msra.mxu1 %v1313_v34  ;;  %v1599_v2 = vld [vmem:[#allocation5 + $0x80] sm:$0xff]   ;;  %v1617_v5 = vld [vmem:[#allocation5 + $0x1d8] sm:$0xff]  }
  0x2f   :  { %1411 = vmatprep.subr.bf16.mxu0 %v1568_v35  ;;  %1433 = vmatprep.subr.bf16.mxu1 %v1569_v36  ;;  %v1784_v8 = vld [vmem:[%s1890_s5] sm:$0xff]  ;;  %v1602_v36 = vld [vmem:[#allocation5 + $0x138] sm:$0xff]  }
  0x30   :  { %v76_v12 = vrot.slane %v1784_v8, %v75_v7  ;;  %v84_v13 = vrot.slane %v1784_v8, %v83_v9  ;;  %v80_v14 = vrot.slane %v1784_v8, %v79_v10  ;;  %v88_v16 = vrot.slane %v1784_v8, %v87_v11  ;;  %v1618_v7 = vld [vmem:[#allocation5 + $0x118] sm:$0xff]  }
  0x31   :  { %1325 = vmatmul.mubr.msk.bf16.vlgmr.msra.gmra.mxu0 %vm193_vm0, %v54_v27  ;;  %1326 = vmatmul.mubr.msk.bf16.vlgmr.msra.gmra.mxu1 %vm193_vm0, %v54_v27  ;;  %v99_v9 = vsub.s32 6, %v1778_v6  ;;  %v91_v10 = vsub.s32 4, %v1778_v6  ;;  %v1619_v11 = vld [vmem:[#allocation5 + $0x198] sm:$0xff]   ;;  %v1626_v6 = vld [vmem:[#allocation5 + $0x108] sm:$0xff]  }
  0x32   :  { %1412 = vmatpush3.bf16.msra.mxu0 %v1570_v37  ;;  %1434 = vmatpush3.bf16.msra.mxu1 %v1571_v38  ;;  %v96_v37 = vrot.slane %v1784_v8, %v95_v23  ;;  %v1628_v23 = vld [vmem:[#allocation5 + $0x140] sm:$0xff]  }
  0x33   :  { %1413 = vmatprep.subr.bf16.mxu0 %v1572_v39  ;;  %1435 = vmatprep.subr.bf16.mxu1 %v1573_v40  ;;  %v1603_v40 = vld [vmem:[#allocation5 + $0x1b8] sm:$0xff]  }
  0x36   :  { %1414 = vmatpush3.bf16.msra.mxu0 %v1574_v41  ;;  %1436 = vmatpush3.bf16.msra.mxu1 %v1575_v42  ;;  %v1604_v41 = vld [vmem:[#allocation5 + $0x170] sm:$0xff]  }
  0x37   :  { %1415 = vmatprep.subr.bf16.mxu0 %v1576_v43  ;;  %1437 = vmatprep.subr.bf16.mxu1 %v1577_v44  ;;  %v104_v43 = vrot.slane %v1784_v8, %v103_v28  ;;  %v1605_v44 = vld [vmem:[#allocation5 + $0x1f0] sm:$0xff]  }
  0x3a   :  { %1416 = vmatpush3.bf16.msra.mxu0 %v1578_v45  ;;  %1438 = vmatpush3.bf16.msra.mxu1 %v1579_v46 }
  0x3b   :  { %1417 = vmatprep.subr.bf16.mxu0 %v1580_v47  ;;  %1439 = vmatprep.subr.bf16.mxu1 %v1581_v48  ;;  %v1606_v47 = vld [vmem:[#allocation5 + $0x130] sm:$0xff]  }
  0x3e   :  { %1418 = vmatpush3.bf16.msra.mxu0 %v1582_v49  ;;  %1440 = vmatpush3.bf16.msra.mxu1 %v1583_v50  ;;  %v1607_v50 = vld [vmem:[#allocation5 + $0x1b0] sm:$0xff]  }
  0x3f   :  { %1419 = vmatprep.subr.bf16.mxu0 %v1584_v51  ;;  %1441 = vmatprep.subr.bf16.mxu1 %v1585_v52  ;;  %v1608_v51 = vld [vmem:[#allocation5 + $0x168] sm:$0xff]  }
  0x42   :  { %1420 = vmatpush3.bf16.msra.mxu0 %v1586_v53  ;;  %1442 = vmatpush3.bf16.msra.mxu1 %v1587_v54  ;;  %v1609_v54 = vld [vmem:[#allocation5 + $0x1e8] sm:$0xff]  }
  0x43   :  { %1421 = vmatprep.subr.bf16.mxu0 %v1588_v55  ;;  %1443 = vmatprep.subr.bf16.mxu1 %v1589_v56 }
  0x46   :  { %1422 = vmatpush3.bf16.msra.mxu0 %v1590_v57  ;;  %1444 = vmatpush3.bf16.msra.mxu1 %v1591_v58 }
  0x47   :  { %1423 = vmatprep.subr.bf16.mxu0 %v1592_v59  ;;  %1445 = vmatprep.subr.bf16.mxu1 %v1593_v60  ;;  %v1610_v59 = vld [vmem:[#allocation5 + $0x128] sm:$0xff]  }
  0x4a   :  { %1424 = vmatpush3.bf16.msra.mxu0 %v1594_v61  ;;  %1446 = vmatpush3.bf16.msra.mxu1 %v1595_v62  ;;  %v1611_v62 = vld [vmem:[#allocation5 + $0x1a8] sm:$0xff]  }
  0x4b   :  { %1425 = vmatprep.subr.bf16.mxu0 %v1596_v63  ;;  %1447 = vmatprep.subr.bf16.mxu1 %v1597_v0  ;;  %v1612_v63 = vld [vmem:[#allocation5 + $0x160] sm:$0xff]  }
  0x4e   :  { %1426 = vmatpush3.bf16.msra.mxu0 %v1598_v1  ;;  %1448 = vmatpush3.bf16.msra.mxu1 %v1599_v2  ;;  %v1613_v1 = vld [vmem:[#allocation5 + $0x1e0] sm:$0xff]  }
  0x4f   :  { %1455 = vmatprep.subr.bf16.mxu0 %v1600_v3  ;;  %1477 = vmatprep.subr.bf16.mxu1 %v1601_v4  ;;  %v1614_v2 = vld [vmem:[#allocation5 + $0x120] sm:$0xff]   ;;  %v1616_v4 = vld [vmem:[#allocation5 + $0x158] sm:$0xff]  }
  0x50   :  { %v1615_v3 = vld [vmem:[#allocation5 + $0x1a0] sm:$0xff]  }
  0xe9   :  { %v231_v15 = vpop.f32.mrf.mxu0  ;;  %v272_v18 = vpop.f32.mrf.mxu1 }
  0xea   :  { %v232_v17 = vadd.f32 %v231_v15, %v76_v12  ;;  %v273_v19 = vadd.f32 %v272_v18, %v84_v13  ;;  %v1620_v12 = vld [vmem:[#allocation5 + $0x150] sm:$0xff]   ;;  %v1624_v18 = vld [vmem:[#allocation5 + $0x148] sm:$0xff]  }
  0xeb   :  { %v233_v20 = vpop.f32.mrf.mxu0  ;;  %v274_v22 = vpop.f32.mrf.mxu1  ;;  %v1621_v13 = vld [vmem:[#allocation5 + $0x1d0] sm:$0xff]  }
  0xec   :  { %v234_v21 = vadd.f32 %v233_v20, %v80_v14  ;;  %v361_v24 = vmax.f32 %v232_v17, 0.0  ;;  %v363_v25 = vmax.f32 %v273_v19, 0.0  ;;  %v275_v26 = vadd.f32 %v274_v22, %v88_v16  ;;  %v1622_v15 = vld [vmem:[#allocation5 + $0x110] sm:$0xff]   ;;  %v1625_v19 = vld [vmem:[#allocation5 + $0x1c8] sm:$0xff]  }
  0xed   :  { %v235_v27 = vpop.f32.mrf.mxu0  ;;  %v276_v30 = vpop.f32.mrf.mxu1  ;;  %v100_v14 = vrot.slane %v1784_v8, %v99_v9  ;;  %v92_v16 = vrot.slane %v1784_v8, %v91_v10  ;;  %v1623_v17 = vld [vmem:[#allocation5 + $0x190] sm:$0xff]   ;;  %v1627_v22 = vld [vmem:[#allocation5 + $0x188] sm:$0xff]   ;;  %v1630_v8 = vld [vmem:[#allocation5 + $0x100] sm:$0xff]  }
  0xee   :  { %v362_v29 = vmax.f32 %v234_v21, 0.0  ;;  %v364_v31 = vmax.f32 %v275_v26, 0.0  ;;  %v371_v33 = vpack.c.bf16 %v363_v25, %v363_v25  ;;  %v369_v38 = vpack.c.bf16 %v361_v24, %v361_v24  ;;  %v1629_v24 = vld [vmem:[#allocation5 + $0x1c0] sm:$0xff]   ;;  %v1632_v30 = vld [vmem:[%s1888_s3 + $0x38] sm:$0xff]   ;;  %v1646_v10 = vld [vmem:[%s1889_s4 + $0x8] sm:$0xff]  }
  0xef   :  { %v236_v32 = vpop.f32.mrf.mxu0  ;;  %v277_v35 = vpop.f32.mrf.mxu1  ;;  %v1631_v27 = vld [vmem:[#allocation5 + $0x180] sm:$0xff]  }
  0xf0   :  { %v370_v34 = vpack.c.bf16 %v362_v29, %v362_v29  ;;  %v372_v39 = vpack.c.bf16 %v364_v31, %v364_v31  ;;  %v1725_v31 = vmov 0.0   ;;  %v1633_v32 = vld [vmem:[%s1888_s3 + $0x30] sm:$0xff]   ;;  %v1636_v35 = vld [vmem:[%s1888_s3 + $0x18] sm:$0xff]  }
  0xf1   :  { %v1796_v42 = vpop.f32.mrf.mxu0  ;;  %v354_v45 = vpop.f32.mrf.mxu1 }
  0xf2   :  { %928 = vmatprep.mubr.bf16.mxu0 %v370_v34  ;;  %968 = vmatprep.mubr.bf16.mxu1 %v372_v39  ;;  %v355_v20 = vadd.f32 %v354_v45, %v100_v14  ;;  %v314_v21 = vadd.f32 %v1796_v42, %v92_v16  ;;  %v1635_v34 = vld [vmem:[%s1888_s3 + $0x20] sm:$0xff]   ;;  %v1640_v39 = vld [vmem:[%s1889_s4 + $0x38] sm:$0xff]  }
  0xf3   :  { %929 = vmatmul.mubr.bf16.vlgmr.msra.gmra.mxu0 %v369_v38  ;;  %v315_v46 = vpop.f32.mrf.mxu0  ;;  %969 = vmatmul.mubr.bf16.vlgmr.msra.gmra.mxu1 %v371_v33  ;;  %v356_v49 = vpop.f32.mrf.mxu1  ;;  %v1634_v33 = vld [vmem:[%s1888_s3 + $0x28] sm:$0xff]   ;;  %v1639_v38 = vld [vmem:[%s1888_s3] sm:$0xff]  }
  0xf4   :  { %1456 = vmatpush3.bf16.msra.mxu0 %v1602_v36  ;;  %v316_v48 = vadd.f32 %v315_v46, %v96_v37  ;;  %1478 = vmatpush3.bf16.msra.mxu1 %v1603_v40  ;;  %v357_v53 = vadd.f32 %v356_v49, %v104_v43  ;;  %v367_v25 = vmax.f32 %v355_v20, 0.0  ;;  %v365_v26 = vmax.f32 %v314_v21, 0.0  ;;  %v1637_v36 = vld [vmem:[%s1888_s3 + $0x10] sm:$0xff]   ;;  %v1638_v37 = vld [vmem:[%s1888_s3 + $0x8] sm:$0xff]   ;;  %v1643_v42 = vld [vmem:[%s1889_s4 + $0x20] sm:$0xff]  }
  0xf5   :  { %1457 = vmatprep.subr.bf16.mxu0 %v1604_v41  ;;  %v317_v52 = vpop.f32.mrf.mxu0  ;;  %1479 = vmatprep.subr.bf16.mxu1 %v1605_v44  ;;  %v358_v56 = vpop.f32.mrf.mxu1  ;;  %v1641_v40 = vld [vmem:[%s1889_s4 + $0x30] sm:$0xff]   ;;  %v1642_v41 = vld [vmem:[%s1889_s4 + $0x28] sm:$0xff]   ;;  %v1644_v43 = vld [vmem:[%s1889_s4 + $0x18] sm:$0xff]  }
  0xf6   :  { %v366_v55 = vmax.f32 %v316_v48, 0.0  ;;  %v368_v57 = vmax.f32 %v357_v53, 0.0  ;;  %v375_v28 = vpack.c.bf16 %v367_v25, %v367_v25  ;;  %v373_v29 = vpack.c.bf16 %v365_v26, %v365_v26  ;;  %v1645_v44 = vld [vmem:[%s1889_s4 + $0x10] sm:$0xff]   ;;  %v1401_v20 = vld [vmem:[%s1890_s5 + $0xa] ss:$0 sm:$0xff] }
  0xf7   :  { %v318_v58 = vpop.f32.mrf.mxu0  ;;  %v359_v61 = vpop.f32.mrf.mxu1 }
  0xf8   :  { %1458 = vmatpush3.bf16.msra.mxu0 %v1606_v47  ;;  %v374_v60 = vpack.c.bf16 %v366_v55, %v366_v55  ;;  %1480 = vmatpush3.bf16.msra.mxu1 %v1607_v50  ;;  %v376_v0 = vpack.c.bf16 %v368_v57, %v368_v57 }
  0xf9   :  { %1459 = vmatprep.subr.bf16.mxu0 %v1608_v51  ;;  %1481 = vmatprep.subr.bf16.mxu1 %v1609_v54  ;;  %v1327_v54 = vld [vmem:[%s1890_s5 + $0x8] ss:$0 sm:$0xff] }
  0xfa   :  { %1008 = vmatprep.mubr.bf16.mxu0 %v374_v60  ;;  %1048 = vmatprep.mubr.bf16.mxu1 %v376_v0 }
  0xfc   :  { %1460 = vmatpush3.bf16.msra.mxu0 %v1610_v59  ;;  %1482 = vmatpush3.bf16.msra.mxu1 %v1611_v62 }
  0xfd   :  { %1461 = vmatprep.subr.bf16.mxu0 %v1612_v63  ;;  %1483 = vmatprep.subr.bf16.mxu1 %v1613_v1 }
 0x100   :  { %1462 = vmatpush3.bf16.msra.mxu0 %v1614_v2  ;;  %1484 = vmatpush3.bf16.msra.mxu1 %v1615_v3 }
 0x101   :  { %1463 = vmatprep.subr.bf16.mxu0 %v1616_v4  ;;  %1485 = vmatprep.subr.bf16.mxu1 %v1617_v5 }
 0x104   :  { %1464 = vmatpush3.bf16.msra.mxu0 %v1618_v7  ;;  %1486 = vmatpush3.bf16.msra.mxu1 %v1619_v11  ;;  %v1647_v11 = vld [vmem:[%s1889_s4] sm:$0xff]  }
 0x105   :  { %1465 = vmatprep.subr.bf16.mxu0 %v1620_v12  ;;  %1487 = vmatprep.subr.bf16.mxu1 %v1621_v13  ;;  %v1392_v12 = vld [vmem:[%s1890_s5 + $0x9] ss:$0 sm:$0xff] }
 0x108   :  { %1466 = vmatpush3.bf16.msra.mxu0 %v1622_v15  ;;  %1488 = vmatpush3.bf16.msra.mxu1 %v1623_v17 }
 0x109   :  { %1467 = vmatprep.subr.bf16.mxu0 %v1624_v18  ;;  %1489 = vmatprep.subr.bf16.mxu1 %v1625_v19 }
 0x10c   :  { %1468 = vmatpush3.bf16.msra.mxu0 %v1626_v6  ;;  %1490 = vmatpush3.bf16.msra.mxu1 %v1627_v22 }
 0x10d   :  { %1469 = vmatprep.subr.bf16.mxu0 %v1628_v23  ;;  %1491 = vmatprep.subr.bf16.mxu1 %v1629_v24 }
 0x110   :  { %1470 = vmatpush3.bf16.msra.mxu0 %v1630_v8  ;;  %1492 = vmatpush3.bf16.msra.mxu1 %v1631_v27 }
 0x111   :  { %1517 = vmatprep.subr.bf16.mxu0 %v1725_v31  ;;  %1537 = vmatprep.subr.bf16.mxu1 %v1725_v31 }
 0x113   :  { %1009 = vmatmul.mubr.bf16.vlgmr.msra.gmra.mxu0 %v373_v29  ;;  %1049 = vmatmul.mubr.bf16.vlgmr.msra.gmra.mxu1 %v375_v28 }
 0x114   :  { %1518 = vmatpush3.bf16.msra.mxu0 %v1632_v30  ;;  %1533 = vmatprep.mubr.msk.bf16.mxu0 %vm1726_vm1, %v1725_v31 }
 0x115   :  { %1519 = vmatprep.subr.bf16.mxu0 %v1725_v31  ;;  %1553 = vmatprep.mubr.msk.bf16.mxu1 %vm1726_vm1, %v1725_v31 }
 0x116   :  { %1538 = vmatpush3.bf16.msra.mxu1 %v1640_v39 }
 0x117   :  { %1539 = vmatprep.subr.bf16.mxu1 %v1725_v31 }
 0x118   :  { %1520 = vmatpush3.bf16.msra.mxu0 %v1633_v32 }
 0x119   :  { %1521 = vmatprep.subr.bf16.mxu0 %v1725_v31 }
 0x11a   :  { %1540 = vmatpush3.bf16.msra.mxu1 %v1641_v40 }
 0x11b   :  { %1541 = vmatprep.subr.bf16.mxu1 %v1725_v31 }
 0x11c   :  { %1522 = vmatpush3.bf16.msra.mxu0 %v1634_v33 }
 0x11d   :  { %1523 = vmatprep.subr.bf16.mxu0 %v1725_v31 }
 0x11e   :  { %1542 = vmatpush3.bf16.msra.mxu1 %v1642_v41 }
 0x11f   :  { %1543 = vmatprep.subr.bf16.mxu1 %v1725_v31 }
 0x120   :  { %1524 = vmatpush3.bf16.msra.mxu0 %v1635_v34 }
 0x121   :  { %1525 = vmatprep.subr.bf16.mxu0 %v1725_v31 }
 0x122   :  { %1544 = vmatpush3.bf16.msra.mxu1 %v1643_v42 }
 0x123   :  { %1545 = vmatprep.subr.bf16.mxu1 %v1725_v31 }
 0x124   :  { %1526 = vmatpush3.bf16.msra.mxu0 %v1636_v35 }
 0x125   :  { %1527 = vmatprep.subr.bf16.mxu0 %v1725_v31 }
 0x126   :  { %1546 = vmatpush3.bf16.msra.mxu1 %v1644_v43 }
 0x127   :  { %1547 = vmatprep.subr.bf16.mxu1 %v1725_v31 }
 0x128   :  { %1528 = vmatpush3.bf16.msra.mxu0 %v1637_v36 }
 0x129   :  { %1529 = vmatprep.subr.bf16.mxu0 %v1725_v31 }
 0x12a   :  { %1548 = vmatpush3.bf16.msra.mxu1 %v1645_v44 }
 0x12b   :  { %1549 = vmatprep.subr.bf16.mxu1 %v1725_v31 }
 0x12c   :  { %1530 = vmatpush3.bf16.msra.mxu0 %v1638_v37 }
 0x12d   :  { %1531 = vmatprep.subr.bf16.mxu0 %v1725_v31 }
 0x12e   :  { %1550 = vmatpush3.bf16.msra.mxu1 %v1646_v10 }
 0x12f   :  { %1551 = vmatprep.subr.bf16.mxu1 %v1725_v31 }
 0x130   :  { %1532 = vmatpush3.bf16.msra.mxu0 %v1639_v38 }
 0x132   :  { %1552 = vmatpush3.bf16.msra.mxu1 %v1647_v11 }
 0x1b3   :  { %v1427_v45 = vpop.f32.mrf.mxu0  ;;  %v1449_v46 = vpop.f32.mrf.mxu1 }
 0x1b5   :  { %v1428_v47 = vpop.f32.mrf.mxu0  ;;  %v1450_v48 = vpop.f32.mrf.mxu1 }
 0x1b6   :  { %v1429_v53 = vadd.f32 %v1428_v47, %v1427_v45  ;;  %v1451_v57 = vadd.f32 %v1450_v48, %v1449_v46 }
 0x1b7   :  { %v1430_v49 = vpop.f32.mrf.mxu0  ;;  %v1452_v50 = vpop.f32.mrf.mxu1 }
 0x1b8   :  { %v931_v55 = vadd.f32 %v1429_v53, %v1327_v54 }
 0x1b9   :  { %v1431_v51 = vpop.f32.mrf.mxu0  ;;  %v1453_v52 = vpop.f32.mrf.mxu1 }
 0x1ba   :  { %v971_v60 = vadd.f32 %v1451_v57, %v931_v55 }
 0x1d3   :  { %v1471_v56 = vpop.f32.mrf.mxu0  ;;  %v1493_v58 = vpop.f32.mrf.mxu1 }
 0x1d5   :  { %v1472_v59 = vpop.f32.mrf.mxu0  ;;  %v1494_v62 = vpop.f32.mrf.mxu1 }
 0x1d6   :  { %v1473_v61 = vadd.f32 %v1472_v59, %v1471_v56  ;;  %v1495_v1 = vadd.f32 %v1494_v62, %v1493_v58 }
 0x1d7   :  { %v1474_v63 = vpop.f32.mrf.mxu0  ;;  %v1496_v2 = vpop.f32.mrf.mxu1 }
 0x1d8   :  { %v1011_v0 = vadd.f32 %v1473_v61, %v971_v60 }
 0x1d9   :  { %v1475_v3 = vpop.f32.mrf.mxu0  ;;  %v1497_v5 = vpop.f32.mrf.mxu1 }
 0x1da   :  { %v1051_v4 = vadd.f32 %v1495_v1, %v1011_v0 }
 0x1dc   :  { %v1056_v7 = vmax.f32 %v1051_v4, 0.0 }
 0x1de   :  { %v1057_v9 = vpack.c.bf16 %v1056_v7, %v1056_v7 }
 0x1e0   :  { %1534 = vmatmul.mubr.bf16.vlgmr.msra.gmra.mxu0 %v1057_v9 }
 0x2a0   :  { %v1163_v13 = vpop.f32.mrf.mxu0 }
 0x2a1   :  { %v1164_v14 = vadd.f32 %v1392_v12, %v1163_v13 }
 0x2a2   :  { %v1535_v15 = vpop.f32.mrf.mxu0 }
 0x2a3   :  { %v1169_v16 = vmax.f32 %v1164_v14, 0.0 }
 0x2a4   :  { %v1166_v17 = vpop.f32.mrf.mxu0 }
 0x2a5   :  { %v1170_v18 = vpack.c.bf16 %v1169_v16, %v1169_v16 }
 0x2a6   :  { %v1536_v19 = vpop.f32.mrf.mxu0 }
 0x2a7   :  { %1554 = vmatmul.mubr.bf16.vlgmr.msra.gmra.mxu1 %v1170_v18 }
 0x367   :  { %v1276_v6 = vpop.f32.mrf.mxu1 }
 0x368   :  { %v1277_v21 = vadd.f32 %v1401_v20, %v1276_v6 }
 0x369   :  { %v1555_v22 = vpop.f32.mrf.mxu1 }
 0x36a   :  { %v1410_v23 = vmul.f32 -1.442695, %v1277_v21 }
 0x36b   :  { %v1279_v24 = vpop.f32.mrf.mxu1 }
 0x36c   :  { %1648 = vpow2.f32 %v1410_v23 }
 0x36d   :  { %v1556_v25 = vpop.f32.mrf.mxu1 }
 0x379   :  { %v1649_v8 = vpop.eup %1648 }
 0x37a   :  { %v1285_v26 = vadd.f32 1.0, %v1649_v8 }
 0x37c   :  { %1650 = vrcp.f32 %v1285_v26 }
 0x389   :  { %v1651_v27 = vpop.eup %1650 }
 0x38a   :  { %1288 = vst.msk [vmem:[#allocation7] sm:$0xff] %vm193_vm0, %v1651_v27 }
 0x38b   :  { %1293 = vsyncadd [#allocation4], 96  ;;  %s1727_s4 = smov [#allocation7]  }
 0x38c   :  { %s1294_s23 = sshll.u32 %s1727_s4, 4  ;;  %s1295_s23 = int_to_ptr.vmem [resolvable:$true] %s1294_s23 }
 0x38d   :  { %s1692_s24 = scalar_lea.vmem %s1295_s23, 32  ;;  %s1696_s5 = scalar_lea.vmem %s1295_s23, 128 }
 0x38e   :  { %p1693_p10 = scmp.ne.s32.totalorder %s1295_s23, %s1692_s24  ;;  %p1697_p11 = scmp.lt.s32.totalorder %s1295_s23, %s1295_s23 }
 0x38f   :  { %p1698_p12 = scmp.lt.s32.totalorder %s1696_s5, %s1692_s24 }
 0x391   :  { %p1699_p13 = por %p1698_p12, %p1697_p11 }
 0x393   :  { %p1700_p0 = pnand %p1699_p13, %p1693_p10 }
 0x395   :  { %1703 = shalt.err (!%p1700_p0)
}
 0x396   :  { %s1728_s26 = smov 2  }
 0x397   :  { %1300 = dma.vmem_to_hbm [thread:$0]  %s1295_s23, 32, %s1891_s6, [#allocation4], %s1720_s25, %s1720_s25, %s1728_s26  }
 0x398   :  { %1716 = dma.done.wait [#allocation4], 128  }
 0x399   :  { %1717 = vsyncadd [#allocation4], 4294967168 }
 0x39a   :  { %1304 = vsyncpa [#allocation3], 1 }
 0x39b   :  { %1305 = vsyncpa [#allocation6], 1 }
 0x39c   :  { %1306 = vsyncpa [#allocation4], 1 }

</bundles_post_ra>
